<compile_context>
chip_gen: v6e
topology: v6e:2x2x1
jax: 0.10.0
libtpu: 0.0.40
codegen_flags: <defaults>
</compile_context>

<pallas_src>
import jax
import jax.numpy as jnp
from jax import lax
from jax.experimental import pallas as pl
from jax.experimental.pallas import tpu as pltpu


# ----------------------------------------------------------------------------
# Window construction (matches gaussian() / create_window_3D of the reference)
# ----------------------------------------------------------------------------
def _gaussian_1d(window_size: int, sigma: float = 1.5) -> jnp.ndarray:
    x = jnp.arange(window_size, dtype=jnp.float32)
    g = jnp.exp(-((x - window_size // 2) ** 2) / (2.0 * sigma ** 2))
    return g / jnp.sum(g)


def _band_matrix(n: int, g: jnp.ndarray, window_size: int) -> jnp.ndarray:
    """G[i, j] = g[j - i + pad] when in range, else 0 (zero 'same' padding)."""
    pad = window_size // 2
    ii = jnp.arange(n)[:, None]
    jj = jnp.arange(n)[None, :]
    k = jj - ii + pad
    valid = (k >= 0) & (k < window_size)
    return jnp.where(valid, g[jnp.clip(k, 0, window_size - 1)], 0.0).astype(jnp.float32)


# ----------------------------------------------------------------------------
# Pallas kernel: B volumes per step, five conv inputs M-stacked, everything 2-D
# ----------------------------------------------------------------------------
def _ssim3d_kernel(x_ref, y_ref, ghwt_ref, gdb_ref, out_ref):
    x = x_ref[...]                        # (BD, HW)  f32
    y = y_ref[...]
    ghwt = ghwt_ref[...]                  # (HW, HW)        kron(G_h, G_w)^T
    gdb = gdb_ref[...]                    # (5*BD, 5*BD)    kron(I_{5B}, G_d)

    bd, hw = x.shape

    # One M-stacked LHS -> a single H/W-conv matmul and a single depth-conv
    # matmul per grid step (fills the MXU M dimension, no weight swaps).
    stacked = jnp.concatenate([x, y, x * x, y * y, x * y], axis=0)   # (5*BD, HW)
    t = jnp.dot(stacked, ghwt, preferred_element_type=jnp.float32)   # H/W conv
    c = jnp.dot(gdb, t, preferred_element_type=jnp.float32)          # depth conv

    mu1 = c[0 * bd:1 * bd]
    mu2 = c[1 * bd:2 * bd]
    mu1_sq = mu1 * mu1
    mu2_sq = mu2 * mu2
    mu1_mu2 = mu1 * mu2
    sigma1_sq = c[2 * bd:3 * bd] - mu1_sq
    sigma2_sq = c[3 * bd:4 * bd] - mu2_sq
    sigma12 = c[4 * bd:5 * bd] - mu1_mu2

    c1 = 0.01 ** 2
    c2 = 0.03 ** 2
    num = (2.0 * mu1_mu2 + c1) * (2.0 * sigma12 + c2)
    den = (mu1_sq + mu2_sq + c1) * (sigma1_sq + sigma2_sq + c2)
    # Exact divide: approx reciprocal only matters once VALU saturates and
    # would risk the 1e-4 tolerance.
    ssim_map = num / den

    # Lane-dense (8, HW) partial sums -> unmasked full-tile store per step.
    if bd % 8 == 0 and bd >= 8:
        partial = jnp.sum(ssim_map.reshape(bd // 8, 8, hw), axis=0)
    else:
        row = jnp.sum(ssim_map, axis=0, keepdims=True)
        partial = jnp.concatenate([row, jnp.zeros((7, hw), jnp.float32)], axis=0)
    out_ref[...] = partial.reshape(1, 8, hw)


# ----------------------------------------------------------------------------
# Generation-aware batching heuristic
# ----------------------------------------------------------------------------
def _vmem_budget_bytes() -> int:
    try:
        cap = int(pltpu.get_tpu_info().vmem_capacity_bytes)
    except Exception:
        cap = 64 * 1024 * 1024          # conservative fallback (v7x physical)
    return max(cap // 2, 16 * 1024 * 1024)


def _choose_batch(nc: int, d: int, hw: int) -> int:
    """Largest divisor B of nc such that the per-step footprint fits VMEM,
    the kron(I_{5B}, G_d) depth matrix stays <= 256 rows (bounds its
    mostly-zero FLOPs to <= the H/W conv), and the grid keeps >= 2 steps when
    nc >= 2 so the 'parallel' axis can shard across v7x's two TensorCores."""
    budget = _vmem_budget_bytes()
    fixed = hw * hw * 4                             # ghwt, single-buffered
    best = 1
    for b in range(1, nc + 1):
        if nc % b:
            continue
        if nc >= 2 and nc // b < 2:
            continue                                # keep >= 2 grid steps
        bd = b * d
        if 5 * bd > 256:
            continue                                # cap block-diag depth matrix
        if nc // b > 1 and bd % 8:
            continue                                # sublane-aligned blocks
        per_step = (4 * bd * hw * 4                 # x, y double-buffered
                    + 21 * bd * hw * 4              # stacked LHS + conv outs + temps
                    + (5 * bd) ** 2 * 4             # kron(I_{5B}, G_d), 1 buffer
                    + 2 * 8 * hw * 4)               # out block, double-buffered
        if fixed + per_step <= budget:
            best = b
    return best


# ----------------------------------------------------------------------------
# Wrapper
# ----------------------------------------------------------------------------
def ssim3d_loss(img1: jnp.ndarray, img2: jnp.ndarray,
                window_size: int = 11) -> jnp.ndarray:
    """Returns 1 - SSIM (size_average=True), matching SSIM3D.forward."""
    # TODO(synk): size_average=False (per-sample mean) path not implemented.
    N, C, D, H, W = img1.shape
    NC = N * C
    HW = H * W

    g = _gaussian_1d(window_size)
    gd = _band_matrix(D, g, window_size)
    gh = _band_matrix(H, g, window_size)
    gw = _band_matrix(W, g, window_size)
    # TODO(synk): for HW >~ 1-2K (v5e MXU / v7x VMEM) fall back to separable
    # H and W matmuls + D-tiling with a window//2 halo instead of kron(Gh, Gw).
    ghwt = jnp.kron(gh, gw).T.astype(jnp.float32)              # (HW, HW)

    B = _choose_batch(NC, D, HW)
    if (B * D) % 8 != 0 and NC // B > 1:
        B = NC                      # full-extent block stays layout-legal
    num_steps = NC // B
    BD = B * D
    m5 = 5 * BD
    # Block-diagonal depth weight for the 5-way stacked LHS (size capped by
    # the batch heuristic so its mostly-zero FLOPs never dominate).
    gdb = jnp.kron(jnp.eye(5 * B, dtype=jnp.float32), gd)      # (5*BD, 5*BD)

    x = img1.astype(jnp.float32).reshape(NC * D, HW)
    y = img2.astype(jnp.float32).reshape(NC * D, HW)

    cost = pl.CostEstimate(
        flops=int(num_steps * (2 * m5 * HW * HW + 2 * m5 * m5 * HW
                               + 25 * BD * HW)),
        transcendentals=0,
        bytes_accessed=int(4 * (2 * NC * D * HW + HW * HW + m5 * m5
                                + num_steps * 8 * HW)),
    )

    partials = pl.pallas_call(
        _ssim3d_kernel,
        out_shape=jax.ShapeDtypeStruct((num_steps, 8, HW), jnp.float32),
        grid=(num_steps,),
        in_specs=[
            pl.BlockSpec((BD, HW), lambda i: (i, 0)),
            pl.BlockSpec((BD, HW), lambda i: (i, 0)),
            # Constant weights: never re-indexed across steps -> one VMEM copy.
            pl.BlockSpec((HW, HW), lambda i: (0, 0),
                         pipeline_mode=pl.Buffered(1)),
            pl.BlockSpec((m5, m5), lambda i: (0, 0),
                         pipeline_mode=pl.Buffered(1)),
        ],
        out_specs=pl.BlockSpec((1, 8, HW), lambda i: (i, 0, 0)),
        compiler_params=pltpu.CompilerParams(
            dimension_semantics=("parallel",),
            vmem_limit_bytes=_vmem_budget_bytes()),
        cost_estimate=cost,
    )(x, y, ghwt, gdb)

    mean_ssim = jnp.sum(partials) / (NC * D * H * W)
    return 1.0 - mean_ssim


# ----------------------------------------------------------------------------
# Pure-JAX reference (direct depthwise 3D conv, matches F.conv3d semantics)
# ----------------------------------------------------------------------------
def _ssim3d_loss_ref(img1, img2, window_size=11):
    N, C, D, H, W = img1.shape
    g = _gaussian_1d(window_size)
    w3 = (g[:, None, None] * g[None, :, None] * g[None, None, :]).astype(jnp.float32)
    window = jnp.broadcast_to(w3, (C, 1, window_size, window_size, window_size))
    pad = window_size // 2

    def conv(a):
        return lax.conv_general_dilated(
            a.astype(jnp.float32), window,
            window_strides=(1, 1, 1),
            padding=[(pad, pad)] * 3,
            dimension_numbers=("NCDHW", "OIDHW", "NCDHW"),
            feature_group_count=C)

    mu1, mu2 = conv(img1), conv(img2)
    mu1_sq, mu2_sq, mu1_mu2 = mu1 * mu1, mu2 * mu2, mu1 * mu2
    s1 = conv(img1 * img1) - mu1_sq
    s2 = conv(img2 * img2) - mu2_sq
    s12 = conv(img1 * img2) - mu1_mu2
    c1, c2 = 0.01 ** 2, 0.03 ** 2
    ssim_map = ((2 * mu1_mu2 + c1) * (2 * s12 + c2)) / (
        (mu1_sq + mu2_sq + c1) * (s1 + s2 + c2))
    return 1.0 - jnp.mean(ssim_map)


if __name__ == "__main__":
    key = jax.random.PRNGKey(0)
    k1, k2 = jax.random.split(key)
    N, C, D, H, W = 2, 2, 16, 16, 16
    img1 = jax.random.uniform(k1, (N, C, D, H, W), dtype=jnp.float32)
    img2 = jax.random.uniform(k2, (N, C, D, H, W), dtype=jnp.float32)

    out = jax.block_until_ready(ssim3d_loss(img1, img2, window_size=11))
    ref = jax.block_until_ready(_ssim3d_loss_ref(img1, img2, window_size=11))

    assert abs(float(out) - float(ref)) < 1e-4, (float(out), float(ref))
    print("KERNEL_OK")
</pallas_src>

<mosaic_0001>
module attributes {stable_mosaic.version = 11 : i64} {
  func.func @_ssim3d_kernel(%arg0: i32, %arg1: memref<32x256xf32, #tpu.memory_space<vmem>>, %arg2: memref<32x256xf32, #tpu.memory_space<vmem>>, %arg3: memref<256x256xf32, #tpu.memory_space<vmem>>, %arg4: memref<160x160xf32, #tpu.memory_space<vmem>>, %arg5: memref<1x8x256xf32, #tpu.memory_space<vmem>>) attributes {dimension_semantics = [#tpu.dimension_semantics<parallel>], iteration_bounds = array<i64: 2>, scalar_prefetch = 0 : i64, scratch_operands = 0 : i64, tpu.core_type = #tpu.core_type<tc>, window_params = [{transform_indices = @transform_0, window_bounds = array<i64: 32, 256>}, {transform_indices = @transform_1, window_bounds = array<i64: 32, 256>}, {pipeline_mode = #tpu.pipeline_mode<synchronous>, transform_indices = @transform_2, window_bounds = array<i64: 256, 256>}, {pipeline_mode = #tpu.pipeline_mode<synchronous>, transform_indices = @transform_3, window_bounds = array<i64: 160, 160>}, {transform_indices = @transform_4, window_bounds = array<i64: 1, 8, 256>}]} {
    %c0 = arith.constant 0 : index
    %c0_0 = arith.constant 0 : index
    %0 = vector.load %arg1[%c0, %c0_0] : memref<32x256xf32, #tpu.memory_space<vmem>>, vector<32x256xf32>
    %c0_1 = arith.constant 0 : index
    %c0_2 = arith.constant 0 : index
    %1 = vector.load %arg2[%c0_1, %c0_2] : memref<32x256xf32, #tpu.memory_space<vmem>>, vector<32x256xf32>
    %c0_3 = arith.constant 0 : index
    %c0_4 = arith.constant 0 : index
    %2 = vector.load %arg3[%c0_3, %c0_4] : memref<256x256xf32, #tpu.memory_space<vmem>>, vector<256x256xf32>
    %c0_5 = arith.constant 0 : index
    %c0_6 = arith.constant 0 : index
    %3 = vector.load %arg4[%c0_5, %c0_6] : memref<160x160xf32, #tpu.memory_space<vmem>>, vector<160x160xf32>
    %4 = arith.mulf %0, %0 : vector<32x256xf32>
    %5 = arith.mulf %1, %1 : vector<32x256xf32>
    %6 = arith.mulf %0, %1 : vector<32x256xf32>
    %7 = tpu.concatenate %0, %1, %4, %5, %6 in 0 : vector<32x256xf32>, vector<32x256xf32>, vector<32x256xf32>, vector<32x256xf32>, vector<32x256xf32> -> vector<160x256xf32>
    %cst = arith.constant dense<0.000000e+00> : vector<160x256xf32>
    %8 = tpu.matmul %7, %2, %cst {dimension_numbers = #tpu.dot_dimension_numbers<[1], [0], [0], [1], [0, 0, 1, 1], [], []>} : vector<160x256xf32>, vector<256x256xf32>, vector<160x256xf32> -> vector<160x256xf32>
    %cst_7 = arith.constant dense<0.000000e+00> : vector<160x256xf32>
    %9 = tpu.matmul %3, %8, %cst_7 {dimension_numbers = #tpu.dot_dimension_numbers<[1], [0], [0], [1], [0, 0, 1, 1], [], []>} : vector<160x160xf32>, vector<160x256xf32>, vector<160x256xf32> -> vector<160x256xf32>
    %10 = vector.extract_strided_slice %9 {offsets = [0, 0], sizes = [32, 256], strides = [1, 1]} : vector<160x256xf32> to vector<32x256xf32>
    %11 = vector.extract_strided_slice %9 {offsets = [32, 0], sizes = [32, 256], strides = [1, 1]} : vector<160x256xf32> to vector<32x256xf32>
    %12 = arith.mulf %10, %10 : vector<32x256xf32>
    %13 = arith.mulf %11, %11 : vector<32x256xf32>
    %14 = arith.mulf %10, %11 : vector<32x256xf32>
    %15 = vector.extract_strided_slice %9 {offsets = [64, 0], sizes = [32, 256], strides = [1, 1]} : vector<160x256xf32> to vector<32x256xf32>
    %16 = arith.subf %15, %12 : vector<32x256xf32>
    %17 = vector.extract_strided_slice %9 {offsets = [96, 0], sizes = [32, 256], strides = [1, 1]} : vector<160x256xf32> to vector<32x256xf32>
    %18 = arith.subf %17, %13 : vector<32x256xf32>
    %19 = vector.extract_strided_slice %9 {offsets = [128, 0], sizes = [32, 256], strides = [1, 1]} : vector<160x256xf32> to vector<32x256xf32>
    %20 = arith.subf %19, %14 : vector<32x256xf32>
    %cst_8 = arith.constant 2.000000e+00 : f32
    %21 = vector.broadcast %cst_8 : f32 to vector<32x256xf32>
    %22 = arith.mulf %21, %14 : vector<32x256xf32>
    %cst_9 = arith.constant 9.99999974E-5 : f32
    %23 = vector.broadcast %cst_9 : f32 to vector<32x256xf32>
    %24 = arith.addf %22, %23 : vector<32x256xf32>
    %cst_10 = arith.constant 2.000000e+00 : f32
    %25 = vector.broadcast %cst_10 : f32 to vector<32x256xf32>
    %26 = arith.mulf %25, %20 : vector<32x256xf32>
    %cst_11 = arith.constant 8.99999984E-4 : f32
    %27 = vector.broadcast %cst_11 : f32 to vector<32x256xf32>
    %28 = arith.addf %26, %27 : vector<32x256xf32>
    %29 = arith.mulf %24, %28 : vector<32x256xf32>
    %30 = arith.addf %12, %13 : vector<32x256xf32>
    %cst_12 = arith.constant 9.99999974E-5 : f32
    %31 = vector.broadcast %cst_12 : f32 to vector<32x256xf32>
    %32 = arith.addf %30, %31 : vector<32x256xf32>
    %33 = arith.addf %16, %18 : vector<32x256xf32>
    %cst_13 = arith.constant 8.99999984E-4 : f32
    %34 = vector.broadcast %cst_13 : f32 to vector<32x256xf32>
    %35 = arith.addf %33, %34 : vector<32x256xf32>
    %36 = arith.mulf %32, %35 : vector<32x256xf32>
    %37 = arith.divf %29, %36 : vector<32x256xf32>
    %38 = vector.shape_cast %37 : vector<32x256xf32> to vector<4x8x256xf32>
    %cst_14 = arith.constant dense<0.000000e+00> : vector<8x256xf32>
    %39 = vector.multi_reduction <add>, %38, %cst_14 [0] : vector<4x8x256xf32> to vector<8x256xf32>
    %40 = vector.shape_cast %39 : vector<8x256xf32> to vector<1x8x256xf32>
    %c0_15 = arith.constant 0 : index
    %c0_16 = arith.constant 0 : index
    %c0_17 = arith.constant 0 : index
    %41 = vector.load %arg5[%c0_15, %c0_16, %c0_17] : memref<1x8x256xf32, #tpu.memory_space<vmem>>, vector<1x8x256xf32>
    tpu.vector_store %arg5[%c0_15, %c0_16, %c0_17], %40 {strides = array<i32>} : memref<1x8x256xf32, #tpu.memory_space<vmem>>, vector<1x8x256xf32>,
    return
  }
  func.func @transform_0(%arg0: i32) -> (i32, i32) {
    %c0_i32 = arith.constant 0 : i32
    %c0_i32_0 = arith.constant 0 : i32
    return %arg0, %c0_i32 : i32, i32
  }
  func.func @transform_1(%arg0: i32) -> (i32, i32) {
    %c0_i32 = arith.constant 0 : i32
    %c0_i32_0 = arith.constant 0 : i32
    return %arg0, %c0_i32 : i32, i32
  }
  func.func @transform_2(%arg0: i32) -> (i32, i32) {
    %c0_i32 = arith.constant 0 : i32
    %c0_i32_0 = arith.constant 0 : i32
    %c0_i32_1 = arith.constant 0 : i32
    return %c0_i32, %c0_i32_0 : i32, i32
  }
  func.func @transform_3(%arg0: i32) -> (i32, i32) {
    %c0_i32 = arith.constant 0 : i32
    %c0_i32_0 = arith.constant 0 : i32
    %c0_i32_1 = arith.constant 0 : i32
    return %c0_i32, %c0_i32_0 : i32, i32
  }
  func.func @transform_4(%arg0: i32) -> (i32, i32, i32) {
    %c0_i32 = arith.constant 0 : i32
    %c0_i32_0 = arith.constant 0 : i32
    %c0_i32_1 = arith.constant 0 : i32
    return %arg0, %c0_i32, %c0_i32_0 : i32, i32, i32
  }
}

</mosaic_0001>

<bundles_post_ra>
// kernel: tpu_custom_call.1
= control target key start
LH: loop header
LB: loop body
LE: loop exit
PB: predicated region body
PF: predicated region fallthrough
CT: control target
= control target key end

     0   :  { %s1913_s0 = inlined_call_operand.hbm [shape: f32[64,256], index: 0, kind: input, shape index: {}]   ;;  %s1914_s1 = inlined_call_operand.hbm [shape: f32[64,256], index: 1, kind: input, shape index: {}]   ;;  %s1915_s2 = inlined_call_operand.hbm [shape: f32[256,256], index: 2, kind: input, shape index: {}]   ;;  %s1916_s3 = inlined_call_operand.hbm [shape: f32[160,160], index: 3, kind: input, shape index: {}]   ;;  %s1917_s4 = inlined_call_operand.hbm [shape: f32[2,8,256], index: 4, kind: output, shape index: {}]  }
   0x1   :  { %1925 = sst [smem:[#allocation16_spill]] %s1913_s0 }
   0x2   :  { %9 = vsyncpa [#allocation3], 0 }
   0x3   :  { %11 = vsyncpa [#allocation3 + $0x1], 0 }
   0x4   :  { %12 = vsyncpa [#allocation6], 0 }
   0x5   :  { %14 = vsyncpa [#allocation6 + $0x1], 0 }
   0x6   :  { %15 = vsyncpa [#allocation9], 0 }
   0x7   :  { %16 = vsyncpa [#allocation4], 0 }
   0x8   :  { %18 = vsyncpa [#allocation4 + $0x1], 0  ;;  %s1500_s15 = smov 0   ;;  %s1502_s16 = smov 0  }
   0x9   :  { %s1504_s17 = smov 0   ;;  %s1506_s18 = smov 0  }
   0xa LB: > { %s1521_s19 = sadd.s32 4294967295, %s1466_s18   ;;  %s1143_s20 = sadd.s32 4294967294, %s1466_s18   ;;  %s1466_s18 = sphi %s1506_s18, %s1946_s18   ;;  %s1462_s17 = sphi %s1504_s17, %s1945_s17   ;;  %s1458_s16 = sphi %s1502_s16, %s1944_s16   ;;  %s1454_s15 = sphi %s1500_s15, %s1943_s15  }
   0xb   : > { %p44_p0 = scmp.ne.s32.totalorder %s1458_s16, %s1454_s15  ;;  %p1922_p1 = scmp.eq.s32.totalorder %s1521_s19, 0 }
   0xc   : > { %p136_p2 = scmp.eq.s32.totalorder %s1521_s19, 1  ;;  %p142_p3 = scmp.eq.s32.totalorder %s1143_s20, 1 }
   0xd   : > { %p1530_p4 = por %p1922_p1, %p44_p0  ;;  %p1144_p5 = scmp.ge.s32.totalorder %s1466_s18, 1 }
   0xe   : > { %p1535_p6 = por %p142_p3, %p44_p0  ;;  %p149_p7 = scmp.lt.s32.totalorder %s1466_s18, 3 }
   0xf   : > { %s1926_s21 = scalar_select %p1530_p4, 1, 0 }
  0x10   : > { %s1927_s22 = scalar_select %p1535_p6, 1, 0 }
  0x11   : > { %p1540_p8 = pnand %p1144_p5, %p149_p7  ;;  %s1468_s24 = smov [#allocation7]  }
  0x12   : > { %s161_s25 = sshll.u32 %s1468_s24, 4  ;;  %s1469_s27 = smov [#allocation8]   ;;  %s162_s25 = int_to_ptr.vmem [resolvable:$true] %s161_s25 }
  0x13   : > { %p1206_p9 = pneg %p1540_p8  ;;  %s174_s28 = sshll.u32 %s1469_s27, 4  ;;  %s175_s28 = int_to_ptr.vmem [resolvable:$true] %s174_s28 }
  0x14   : > { %s1293_s29 = scalar_lea.vmem %s162_s25, 8192  ;;  %p1301_p5 = scmp.lt.s32.totalorder %s162_s25, %s162_s25 }
  0x15   : > { %p1549_p11 = pnand %p1206_p9, %p1922_p1  ;;  %p1294_p13 = scmp.ne.s32.totalorder %s162_s25, %s1293_s29 }
  0x16   : > { %p1302_p7 = scmp.lt.s32.totalorder %s1293_s29, %s1293_s29 }
  0x17   : > { %p1284_p12 = pneg %p1549_p11 }
  0x18   : > { %p1303_p10 = por %p1302_p7, %p1301_p5 }
  0x19   : > { %p1296_p0 = pnand %p1294_p13, %p1284_p12 }
  0x1b   : > { %p1297_p3 = pneg %p1296_p0 }
  0x1d   : > { %p1304_p9 = pnand %p1303_p10, %p1297_p3 }
  0x1f   : > { %1307 = shalt.err (!%p1304_p9)
}
  0x20   : > { %s1918_s30 = smov 256   ;;  %s1920_s5 = smov 16  }
  0x21   : > { %1209 = dma.hbm_to_vmem [thread:$0]  (!%p1549_p11), %s1915_s2, 8192, %s162_s25, [#allocation6], %s1918_s30, %s1918_s30, %s1920_s5  }
  0x22   : > { %s1319_s8 = scalar_lea.vmem %s175_s28, 5120  ;;  %p1327_p10 = scmp.lt.s32.totalorder %s175_s28, %s175_s28 }
  0x23   : > { %p1320_p13 = scmp.ne.s32.totalorder %s175_s28, %s1319_s8  ;;  %p1328_p3 = scmp.lt.s32.totalorder %s1319_s8, %s1319_s8 }
  0x25   : > { %p1322_p0 = pnand %p1320_p13, %p1284_p12  ;;  %p1329_p7 = por %p1328_p3, %p1327_p10 }
  0x27   : > { %p1323_p5 = pneg %p1322_p0 }
  0x29   : > { %p1330_p9 = pnand %p1329_p7, %p1323_p5 }
  0x2b   : > { %1333 = shalt.err (!%p1330_p9)
}
  0x2c   : > { %1212 = dma.hbm_to_vmem [thread:$0]  (!%p1549_p11), %s1916_s3, 5120, %s175_s28, [#allocation9], %s1918_s30, %s1918_s30, %s1920_s5  }
  0x2d   : > { %s1578_s11 = sadd.s32 1, %s1466_s18   ;;  %s31_s12 = sadd.s32 1, %s1462_s17 }
  0x2e   : > { %s28_s13 = ssub.s32 %s1466_s18, %s1578_s11  ;;  %p38_p12 = scmp.ne.s32.totalorder %s1462_s17, %s1458_s16 }
  0x2f   : > { %p29_p13 = scmp.eq.s32.totalorder %s28_s13, 0  ;;  %p39_p0 = scmp.eq.s32.totalorder %s1466_s18, 0 }
  0x30   : > { %p1588_p5 = por %p136_p2, %p38_p12  ;;  %p1226_p10 = scmp.lt.s32.totalorder %s1466_s18, 2 }
  0x31   : > { %s1594_s20 = scalar_select %p29_p13, %s1462_s17, %s31_s12  }
  0x32   : > { %s1930_s14 = scalar_select %p1588_p5, 1, 0 }
  0x33   : > { %p40_p3 = por %p39_p0, %p38_p12  ;;  %s188_s24 = sand.u32 1, %s1462_s17  }
  0x34   : > { %s1148_s25 = sshll.u32 %s188_s24, 6  ;;  %s1188_s26 = sshll.u32 %s1466_s18, 10 }
  0x35   : > { %s1931_s0 = sld [smem:[#allocation16_spill]]  ;;  %s192_s6 = scalar_lea.vmem [#allocation2], %s1148_s25 }
  0x36   : > { %s200_s7 = sshll.u32 %s192_s6, 4  ;;  %p1605_p2 = pnand %p1226_p10, %p40_p3  ;;  %s1603_s7 = int_to_ptr.vmem [resolvable:$true] %s200_s7 }
  0x37   : > { %s1612_s12 = scalar_lea.hbm %s1914_s1, %s1188_s26  ;;  %s214_s13 = scalar_lea.vmem [#allocation5], %s1148_s25 }
  0x38   : > { %s1614_s27 = sshll.u32 %s214_s13, 4  ;;  %s1616_s28 = scalar_lea.sflag [#allocation3], %s188_s24  ;;  %s1647_s27 = int_to_ptr.vmem [resolvable:$true] %s1614_s27 }
  0x39   : > { %p1336_p7 = pneg %p1605_p2 }
  0x3b   : > { %s1601_s29 = scalar_lea.hbm %s1931_s0, %s1188_s26  ;;  %s1339_s9 = scalar_lea.hbm %s1931_s0, 2048 }
  0x3c   : > { %s1334_s30 = scalar_lea.hbm %s1601_s29, 1024  ;;  %p1340_p13 = scmp.lt.s32.totalorder %s1601_s29, %s1931_s0 }
  0x3d   : > { %p1335_p11 = scmp.ne.s32.totalorder %s1601_s29, %s1334_s30  ;;  %p1341_p0 = scmp.lt.s32.totalorder %s1339_s9, %s1334_s30 }
  0x3f   : > { %p1337_p9 = pnand %p1336_p7, %p1335_p11  ;;  %p1342_p10 = por %p1341_p0, %p1340_p13 }
  0x41   : > { %p1338_p12 = pneg %p1337_p9 }
  0x43   : > { %p1343_p3 = pnand %p1342_p10, %p1338_p12 }
  0x45   : > { %1346 = shalt.err (!%p1343_p3)
}
  0x46   : > { %s1347_s24 = scalar_lea.vmem %s1603_s7, 1024  ;;  %s1472_s5 = smov [#allocation2]  }
  0x47   : > { %p1348_p1 = scmp.ne.s32.totalorder %s1603_s7, %s1347_s24  ;;  %s1352_s25 = sshll.u32 %s1472_s5, 4  ;;  %s1353_s25 = int_to_ptr.vmem [resolvable:$false] %s1352_s25 }
  0x48   : > { %s1354_s13 = scalar_lea.vmem %s1353_s25, 2048  ;;  %p1355_p6 = scmp.lt.s32.totalorder %s1603_s7, %s1353_s25 }
  0x49   : > { %p1350_p11 = pnand %p1348_p1, %p1336_p7  ;;  %p1356_p5 = scmp.lt.s32.totalorder %s1354_s13, %s1347_s24 }
  0x4b   : > { %p1351_p9 = pneg %p1350_p11  ;;  %p1357_p4 = por %p1356_p5, %p1355_p6 }
  0x4d   : > { %p1358_p13 = pnand %p1357_p4, %p1351_p9 }
  0x4f   : > { %1361 = shalt.err (!%p1358_p13)
}
  0x50   : > { %s1933_s30 = smov 16   ;;  %s1934_s6 = smov 256  }
  0x51   : > { %1216 = dma.hbm_to_vmem [thread:$0]  (!%p1605_p2), %s1601_s29, 1024, %s1603_s7, %s1616_s28, %s1934_s6, %s1934_s6, %s1933_s30  }
  0x52   : > { %s210_s9 = sand.u32 1, %s1466_s18   ;;  %s1362_s26 = scalar_lea.hbm %s1612_s12, 1024 }
  0x53   : > { %s211_s10 = scalar_lea.sflag [#allocation6], %s210_s9  ;;  %p1363_p1 = scmp.ne.s32.totalorder %s1612_s12, %s1362_s26 }
  0x54   : > { %s1367_s25 = scalar_lea.hbm %s1914_s1, 2048  ;;  %p1368_p5 = scmp.lt.s32.totalorder %s1612_s12, %s1914_s1 }
  0x55   : > { %p1365_p4 = pnand %p1363_p1, %p1336_p7  ;;  %p1369_p12 = scmp.lt.s32.totalorder %s1367_s25, %s1362_s26 }
  0x57   : > { %p1366_p6 = pneg %p1365_p4  ;;  %p1370_p0 = por %p1369_p12, %p1368_p5 }
  0x59   : > { %p1371_p10 = pnand %p1370_p0, %p1366_p6 }
  0x5b   : > { %1374 = shalt.err (!%p1371_p10)
}
  0x5c   : > { %s1375_s29 = scalar_lea.vmem %s1647_s27, 1024  ;;  %s1473_s7 = smov [#allocation5]  }
  0x5d   : > { %p1376_p3 = scmp.ne.s32.totalorder %s1647_s27, %s1375_s29  ;;  %s1380_s28 = sshll.u32 %s1473_s7, 4  ;;  %s1381_s28 = int_to_ptr.vmem [resolvable:$false] %s1380_s28 }
  0x5e   : > { %s1382_s9 = scalar_lea.vmem %s1381_s28, 2048  ;;  %p1383_p13 = scmp.lt.s32.totalorder %s1647_s27, %s1381_s28 }
  0x5f   : > { %p1378_p11 = pnand %p1376_p3, %p1336_p7  ;;  %p1384_p1 = scmp.lt.s32.totalorder %s1382_s9, %s1375_s29 }
  0x61   : > { %p1379_p9 = pneg %p1378_p11  ;;  %p1385_p4 = por %p1384_p1, %p1383_p13 }
  0x63   : > { %p1386_p5 = pnand %p1385_p4, %p1379_p9 }
  0x65   : > { %1389 = shalt.err (!%p1386_p5)
}
  0x66   : > { %1219 = dma.hbm_to_vmem [thread:$0]  (!%p1605_p2), %s1612_s12, 1024, %s1647_s27, %s211_s10, %s1934_s6, %s1934_s6, %s1933_s30  }
  0x67   : > { %234 = sbr.rel (%p1540_p8) target bundleno = 776 (0x308), region = 36  ;;  %s1678_s0 = sand.u32 (!%p1540_p8), 1, %s1458_s16  }
  0x68   : > { %s1157_s26 = sshll.u32 (!%p1540_p8), %s1678_s0, 6  ;;  %s237_s24 = scalar_lea.sflag (!%p1540_p8), [#allocation3], %s1678_s0 }
  0x69   : > { %s1682_s5 = scalar_lea.vmem (!%p1540_p8), [#allocation2], %s1157_s26  ;;  %p1935_p7 = scmp.ne.s32.totalorder (!%p1540_p8), %s1926_s21, 0 }
  0x6c   : > { %1433 = dma.done.wait (%p1935_p7), %s237_s24, 1024  }
  0x6d   : > { %1435 = vsyncadd (%p1935_p7), %s237_s24, 4294966272  ;;  %s245_s8 = sand.u32 1, %s1521_s19   ;;  %s1689_s12 = scalar_lea.vmem [#allocation5], %s1157_s26 }
  0x6e   : > { %s246_s23 = scalar_lea.sflag [#allocation6], %s245_s8 }
  0x6f   : > { %1437 = dma.done.wait (%p1935_p7), %s246_s23, 1024  }
  0x70   : > { %1439 = vsyncadd (%p1935_p7), %s246_s23, 4294966272  ;;  %p1936_p8 = scmp.eq.s32.totalorder %s1521_s19, 0 }
  0x72   : > { %1441 = dma.done.wait (%p1936_p8), [#allocation6], 8192   ;;  %p1937_p2 = pmov %p1936_p8 }
  0x74   : > { %1443 = vsyncadd (%p1937_p2), [#allocation6], 4294959104  ;;  %p1938_p6 = pmov %p1937_p2 }
  0x75   : > { %p1939_p12 = pmov %p1937_p2 }
  0x76   : > { %1445 = dma.done.wait (%p1938_p6), [#allocation9], 5120  }
  0x77   : > { %1447 = vsyncadd (%p1939_p12), [#allocation9], 4294962176  ;;  %v336_v0 = vld [vmem:[#allocation7 + $0xf8] sm:$0xff]  ;;  %v335_v1 = vld [vmem:[#allocation7 + $0xf0] sm:$0xff]  ;;  %vm618_vm0 = vcmask 261120   ;;  %s1161_s21 = sshll.u32 %s1678_s0, 4 }
  0x78   : > { %v334_v2 = vld [vmem:[#allocation7 + $0xe8] sm:$0xff]  ;;  %433 = vmatprep.subr.mxu0 %v336_v0  ;;  %v333_v3 = vld [vmem:[#allocation7 + $0xe0] sm:$0xff]  ;;  %v332_v4 = vld [vmem:[#allocation7 + $0xd8] sm:$0xff]  ;;  %s1191_s27 = sshll.u32 %s1521_s19, 8  ;;  %s286_s30 = scalar_lea.vmem [#allocation10], %s1161_s21 }
  0x79   : > { %434 = vmatpush1.msra.mxu0 %v335_v1  ;;  %v331_v5 = vld [vmem:[#allocation7 + $0xd0] sm:$0xff]  ;;  %v330_v6 = vld [vmem:[#allocation7 + $0xc8] sm:$0xff]  ;;  %v329_v7 = vld [vmem:[#allocation7 + $0xc0] sm:$0xff]  ;;  %s1031_s6 = sshll.u32 %s286_s30, 4  ;;  %s1029_s13 = scalar_lea.hbm %s1917_s4, %s1191_s27  ;;  %s1032_s6 = int_to_ptr.vmem [resolvable:$true] %s1031_s6 }
  0x7a   : > { %435 = vmatprep.subr.mxu0 %v334_v2  ;;  %v328_v8 = vld [vmem:[#allocation7 + $0xb8] sm:$0xff]  ;;  %v327_v9 = vld [vmem:[#allocation7 + $0xb0] sm:$0xff]  ;;  %v326_v10 = vld [vmem:[#allocation7 + $0xa8] sm:$0xff]  ;;  %s1017_s29 = scalar_lea.sflag [#allocation4], %s1678_s0  ;;  %s1390_s7 = scalar_lea.vmem %s1032_s6, 256 }
  0x7b   : > { %436 = vmatpush1.msra.mxu0 %v333_v3  ;;  %v325_v11 = vld [vmem:[#allocation7 + $0xa0] sm:$0xff]  ;;  %v324_v12 = vld [vmem:[#allocation7 + $0x98] sm:$0xff]  ;;  %v323_v13 = vld [vmem:[#allocation7 + $0x90] sm:$0xff]  ;;  %p1391_p0 = scmp.ne.s32.totalorder %s1032_s6, %s1390_s7  ;;  %p1940_p10 = scmp.ne.s32.totalorder %s1930_s14, 0 }
  0x7c   : > { %437 = vmatprep.subr.mxu0 %v332_v4  ;;  %v322_v14 = vld [vmem:[#allocation7 + $0x88] sm:$0xff]  ;;  %v321_v15 = vld [vmem:[#allocation7 + $0x80] sm:$0xff]  ;;  %v320_v16 = vld [vmem:[#allocation7 + $0x78] sm:$0xff]  ;;  %s1474_s28 = smov [#allocation10]  }
  0x7d   : > { %438 = vmatpush1.msra.mxu0 %v331_v5  ;;  %v319_v17 = vld [vmem:[#allocation7 + $0x70] sm:$0xff]  ;;  %v318_v18 = vld [vmem:[#allocation7 + $0x68] sm:$0xff]  ;;  %v317_v19 = vld [vmem:[#allocation7 + $0x60] sm:$0xff]  ;;  %p1392_p3 = pnand %p1391_p0, %p1940_p10  ;;  %s1394_s19 = sshll.u32 %s1474_s28, 4  ;;  %s1395_s19 = int_to_ptr.vmem [resolvable:$false] %s1394_s19 }
  0x7e   : > { %439 = vmatprep.subr.mxu0 %v330_v6  ;;  %v316_v20 = vld [vmem:[#allocation7 + $0x58] sm:$0xff]  ;;  %v315_v21 = vld [vmem:[#allocation7 + $0x50] sm:$0xff]  ;;  %v314_v22 = vld [vmem:[#allocation7 + $0x48] sm:$0xff]  ;;  %s1396_s9 = scalar_lea.vmem %s1395_s19, 512  ;;  %p1397_p9 = scmp.lt.s32.totalorder %s1032_s6, %s1395_s19 }
  0x7f   : > { %440 = vmatpush1.msra.mxu0 %v329_v7  ;;  %v313_v23 = vld [vmem:[#allocation7 + $0x40] sm:$0xff]  ;;  %v1704_v24 = vld [vmem:[%s1682_s5 + $0x8] sm:$0xff]  ;;  %v312_v25 = vld [vmem:[#allocation7 + $0x38] sm:$0xff]  ;;  %p1393_p11 = pneg %p1392_p3  ;;  %p1398_p13 = scmp.lt.s32.totalorder %s1396_s9, %s1390_s7 }
  0x80   : > { %441 = vmatprep.subr.mxu0 %v328_v8  ;;  %497 = vmatprep.mubr.f32.mxu0 %v1704_v24  ;;  %v311_v26 = vld [vmem:[#allocation7 + $0x30] sm:$0xff]  ;;  %v310_v27 = vld [vmem:[#allocation7 + $0x28] sm:$0xff]  ;;  %v309_v28 = vld [vmem:[#allocation7 + $0x20] sm:$0xff] }
  0x81   : > { %442 = vmatpush1.msra.mxu0 %v327_v9  ;;  %v308_v29 = vld [vmem:[#allocation7 + $0x18] sm:$0xff]  ;;  %v307_v30 = vld [vmem:[#allocation7 + $0x10] sm:$0xff]  ;;  %v306_v31 = vld [vmem:[#allocation7 + $0x8] sm:$0xff]  ;;  %p1399_p1 = por %p1398_p13, %p1397_p9 }
  0x82   : > { %443 = vmatprep.subr.mxu0 %v326_v10  ;;  %v305_v32 = vld [vmem:[#allocation7] sm:$0xff]  ;;  %v368_v33 = vld [vmem:[#allocation7 + $0x1f8] sm:$0xff]  ;;  %v367_v34 = vld [vmem:[#allocation7 + $0x1f0] sm:$0xff] }
  0x83   : > { %444 = vmatpush1.msra.mxu0 %v325_v11  ;;  %v366_v35 = vld [vmem:[#allocation7 + $0x1e8] sm:$0xff]  ;;  %v365_v36 = vld [vmem:[#allocation7 + $0x1e0] sm:$0xff]  ;;  %v364_v37 = vld [vmem:[#allocation7 + $0x1d8] sm:$0xff]  ;;  %p1400_p4 = pnand %p1399_p1, %p1393_p11 }
  0x84   : > { %445 = vmatprep.subr.mxu0 %v324_v12  ;;  %v363_v38 = vld [vmem:[#allocation7 + $0x1d0] sm:$0xff]  ;;  %v362_v39 = vld [vmem:[#allocation7 + $0x1c8] sm:$0xff]  ;;  %v361_v40 = vld [vmem:[#allocation7 + $0x1c0] sm:$0xff] }
  0x85   : > { %446 = vmatpush1.msra.mxu0 %v323_v13  ;;  %v360_v41 = vld [vmem:[#allocation7 + $0x1b8] sm:$0xff]  ;;  %v359_v42 = vld [vmem:[#allocation7 + $0x1b0] sm:$0xff]  ;;  %v358_v43 = vld [vmem:[#allocation7 + $0x1a8] sm:$0xff] }
  0x86   : > { %447 = vmatprep.subr.mxu0 %v322_v14  ;;  %v357_v44 = vld [vmem:[#allocation7 + $0x1a0] sm:$0xff]  ;;  %v356_v45 = vld [vmem:[#allocation7 + $0x198] sm:$0xff]  ;;  %v355_v46 = vld [vmem:[#allocation7 + $0x190] sm:$0xff] }
  0x87   : > { %448 = vmatpush1.msra.mxu0 %v321_v15  ;;  %v354_v47 = vld [vmem:[#allocation7 + $0x188] sm:$0xff]  ;;  %v353_v48 = vld [vmem:[#allocation7 + $0x180] sm:$0xff]  ;;  %v352_v49 = vld [vmem:[#allocation7 + $0x178] sm:$0xff] }
  0x88   : > { %449 = vmatprep.subr.mxu0 %v320_v16  ;;  %v351_v50 = vld [vmem:[#allocation7 + $0x170] sm:$0xff]  ;;  %v350_v51 = vld [vmem:[#allocation7 + $0x168] sm:$0xff]  ;;  %v349_v52 = vld [vmem:[#allocation7 + $0x160] sm:$0xff]  ;;  %v410_v16 = vmul.f32 %v1704_v24, %v1704_v24 }
  0x89   : > { %450 = vmatpush1.msra.mxu0 %v319_v17  ;;  %v348_v53 = vld [vmem:[#allocation7 + $0x158] sm:$0xff]  ;;  %v347_v54 = vld [vmem:[#allocation7 + $0x150] sm:$0xff]  ;;  %v346_v55 = vld [vmem:[#allocation7 + $0x148] sm:$0xff] }
  0x8a   : > { %451 = vmatprep.subr.mxu0 %v318_v18  ;;  %v345_v56 = vld [vmem:[#allocation7 + $0x140] sm:$0xff]  ;;  %v344_v57 = vld [vmem:[#allocation7 + $0x138] sm:$0xff]  ;;  %v343_v58 = vld [vmem:[#allocation7 + $0x130] sm:$0xff] }
  0x8b   : > { %452 = vmatpush1.msra.mxu0 %v317_v19  ;;  %v342_v59 = vld [vmem:[#allocation7 + $0x128] sm:$0xff]  ;;  %v341_v60 = vld [vmem:[#allocation7 + $0x120] sm:$0xff]  ;;  %v340_v61 = vld [vmem:[#allocation7 + $0x118] sm:$0xff] }
  0x8c   : > { %453 = vmatprep.subr.mxu0 %v316_v20  ;;  %v339_v62 = vld [vmem:[#allocation7 + $0x110] sm:$0xff]  ;;  %v338_v63 = vld [vmem:[#allocation7 + $0x108] sm:$0xff]  ;;  %v337_v0 = vld [vmem:[#allocation7 + $0x100] sm:$0xff] }
  0x8d   : > { %454 = vmatpush1.msra.mxu0 %v315_v21  ;;  %v1708_v1 = vld [vmem:[%s1682_s5] sm:$0xff]  ;;  %v1711_v2 = vld [vmem:[%s1682_s5 + $0x18] sm:$0xff]  ;;  %v1716_v3 = vld [vmem:[%s1682_s5 + $0x10] sm:$0xff] }
  0x8e   : > { %455 = vmatprep.subr.mxu0 %v314_v22  ;;  %v1719_v4 = vld [vmem:[%s1682_s5 + $0x28] sm:$0xff]  ;;  %v1724_v5 = vld [vmem:[%s1682_s5 + $0x20] sm:$0xff]  ;;  %v1727_v6 = vld [vmem:[%s1682_s5 + $0x38] sm:$0xff]  ;;  %v409_v17 = vmul.f32 %v1708_v1, %v1708_v1  ;;  %v412_v18 = vmul.f32 %v1711_v2, %v1711_v2  ;;  %v411_v19 = vmul.f32 %v1716_v3, %v1716_v3 }
  0x8f   : > { %456 = vmatpush1.msra.mxu0 %v313_v23  ;;  %v1732_v7 = vld [vmem:[%s1682_s5 + $0x30] sm:$0xff]  ;;  %v298_v8 = vld [vmem:[%s1689_s12 + $0x8] sm:$0xff]  ;;  %v297_v9 = vld [vmem:[%s1689_s12] sm:$0xff]  ;;  %v414_v20 = vmul.f32 %v1719_v4, %v1719_v4  ;;  %v413_v21 = vmul.f32 %v1724_v5, %v1724_v5  ;;  %v416_v22 = vmul.f32 %v1727_v6, %v1727_v6 }
  0x90   : > { %457 = vmatprep.subr.mxu0 %v312_v25  ;;  %v300_v10 = vld [vmem:[%s1689_s12 + $0x18] sm:$0xff]  ;;  %v299_v11 = vld [vmem:[%s1689_s12 + $0x10] sm:$0xff]  ;;  %v302_v12 = vld [vmem:[%s1689_s12 + $0x28] sm:$0xff]  ;;  %v415_v23 = vmul.f32 %v1732_v7, %v1732_v7  ;;  %v418_v25 = vmul.f32 %v298_v8, %v298_v8 }
  0x91   : > { %458 = vmatpush1.msra.mxu0 %v311_v26  ;;  %v301_v13 = vld [vmem:[%s1689_s12 + $0x20] sm:$0xff]  ;;  %v304_v14 = vld [vmem:[%s1689_s12 + $0x38] sm:$0xff]  ;;  %v303_v15 = vld [vmem:[%s1689_s12 + $0x30] sm:$0xff]  ;;  %v417_v26 = vmul.f32 %v297_v9, %v297_v9 }
  0x92   : > { %459 = vmatprep.subr.mxu0 %v310_v27  ;;  %v420_v27 = vmul.f32 %v300_v10, %v300_v10 }
  0x93   : > { %460 = vmatpush1.msra.mxu0 %v309_v28  ;;  %v419_v28 = vmul.f32 %v299_v11, %v299_v11 }
  0x94   : > { %461 = vmatprep.subr.mxu0 %v308_v29  ;;  %v422_v29 = vmul.f32 %v302_v12, %v302_v12 }
  0x95   : > { %462 = vmatpush1.msra.mxu0 %v307_v30  ;;  %v421_v30 = vmul.f32 %v301_v13, %v301_v13 }
  0x96   : > { %463 = vmatprep.subr.mxu0 %v306_v31  ;;  %v424_v31 = vmul.f32 %v304_v14, %v304_v14 }
  0x97   : > { %464 = vmatpush1.msra.mxu0 %v305_v32  ;;  %v423_v32 = vmul.f32 %v303_v15, %v303_v15 }
  0x98   : > { %465 = vmatprep.subr.mxu0 %v368_v33  ;;  %v426_v33 = vmul.f32 %v298_v8, %v1704_v24  ;;  %v431_v24 = vmul.f32 %v303_v15, %v1732_v7 }
  0x99   : > { %466 = vmatpush2.msra.mxu0 %v367_v34  ;;  %v425_v34 = vmul.f32 %v297_v9, %v1708_v1 }
  0x9a   : > { %467 = vmatprep.subr.mxu0 %v366_v35  ;;  %v428_v35 = vmul.f32 %v300_v10, %v1711_v2 }
  0x9b   : > { %468 = vmatpush2.msra.mxu0 %v365_v36  ;;  %v427_v36 = vmul.f32 %v299_v11, %v1716_v3 }
  0x9c   : > { %469 = vmatprep.subr.mxu0 %v364_v37  ;;  %v430_v37 = vmul.f32 %v302_v12, %v1719_v4 }
  0x9d   : > { %470 = vmatpush2.msra.mxu0 %v363_v38  ;;  %v429_v38 = vmul.f32 %v301_v13, %v1724_v5 }
  0x9e   : > { %471 = vmatprep.subr.mxu0 %v362_v39  ;;  %v432_v39 = vmul.f32 %v304_v14, %v1727_v6 }
  0x9f   : > { %472 = vmatpush2.msra.mxu0 %v361_v40  ;;  %v370_v40 = vld [vmem:[#allocation8 + $0x8] sm:$0xff] }
  0xa0   : > { %473 = vmatprep.subr.mxu0 %v360_v41  ;;  %1162 = vmatprep.mubr.msk.f32.mxu1 %vm618_vm0, %v370_v40  ;;  %v394_v40 = vld [vmem:[#allocation8 + $0xc8] sm:$0xff] }
  0xa1   : > { %474 = vmatpush2.msra.mxu0 %v359_v42 }
  0xa2   : > { %475 = vmatprep.subr.mxu0 %v358_v43 }
  0xa3   : > { %476 = vmatpush2.msra.mxu0 %v357_v44 }
  0xa4   : > { %477 = vmatprep.subr.mxu0 %v356_v45 }
  0xa5   : > { %478 = vmatpush2.msra.mxu0 %v355_v46 }
  0xa6   : > { %479 = vmatprep.subr.mxu0 %v354_v47 }
  0xa7   : > { %480 = vmatpush2.msra.mxu0 %v353_v48 }
  0xa8   : > { %481 = vmatprep.subr.mxu0 %v352_v49 }
  0xa9   : > { %482 = vmatpush2.msra.mxu0 %v351_v50 }
  0xaa   : > { %483 = vmatprep.subr.mxu0 %v350_v51 }
  0xab   : > { %484 = vmatpush2.msra.mxu0 %v349_v52 }
  0xac   : > { %485 = vmatprep.subr.mxu0 %v348_v53 }
  0xad   : > { %486 = vmatpush2.msra.mxu0 %v347_v54 }
  0xae   : > { %487 = vmatprep.subr.mxu0 %v346_v55 }
  0xaf   : > { %488 = vmatpush2.msra.mxu0 %v345_v56 }
  0xb0   : > { %489 = vmatprep.subr.mxu0 %v344_v57 }
  0xb1   : > { %490 = vmatpush2.msra.mxu0 %v343_v58 }
  0xb2   : > { %491 = vmatprep.subr.mxu0 %v342_v59 }
  0xb3   : > { %492 = vmatpush2.msra.mxu0 %v341_v60 }
  0xb4   : > { %493 = vmatprep.subr.mxu0 %v340_v61 }
  0xb5   : > { %494 = vmatpush2.msra.mxu0 %v339_v62 }
  0xb6   : > { %495 = vmatprep.subr.mxu0 %v338_v63 }
  0xb7   : > { %496 = vmatpush2.msra.mxu0 %v337_v0 }
  0xb8   : > { %498 = vmatmul.mubr.f32.vlgmr.msra.gmra.mxu0 %v1708_v1 }
  0xb9   : > { %503 = vmatprep.mubr.f32.mxu0 %v1711_v2 }
  0xbc   : > { %504 = vmatmul.mubr.f32.gmra.mxu0 %v1716_v3 }
  0xbd   : > { %509 = vmatprep.mubr.f32.mxu0 %v1719_v4 }
  0xc0   : > { %510 = vmatmul.mubr.f32.gmra.mxu0 %v1724_v5 }
  0xc1   : > { %515 = vmatprep.mubr.f32.mxu0 %v1727_v6 }
  0xc4   : > { %516 = vmatmul.mubr.f32.gmra.mxu0 %v1732_v7 }
  0xc5   : > { %521 = vmatprep.mubr.f32.mxu0 %v298_v8 }
  0xc8   : > { %522 = vmatmul.mubr.f32.gmra.mxu0 %v297_v9 }
  0xc9   : > { %527 = vmatprep.mubr.f32.mxu0 %v300_v10 }
  0xcc   : > { %528 = vmatmul.mubr.f32.gmra.mxu0 %v299_v11 }
  0xcd   : > { %533 = vmatprep.mubr.f32.mxu0 %v302_v12 }
  0xd0   : > { %534 = vmatmul.mubr.f32.gmra.mxu0 %v301_v13 }
  0xd1   : > { %539 = vmatprep.mubr.f32.mxu0 %v304_v14 }
  0xd4   : > { %540 = vmatmul.mubr.f32.gmra.mxu0 %v303_v15 }
  0xd5   : > { %545 = vmatprep.mubr.f32.mxu0 %v410_v16 }
  0xd8   : > { %546 = vmatmul.mubr.f32.gmra.mxu0 %v409_v17  ;;  %v369_v17 = vld [vmem:[#allocation8] sm:$0xff] }
  0xd9   : > { %551 = vmatprep.mubr.f32.mxu0 %v412_v18  ;;  %v372_v18 = vld [vmem:[#allocation8 + $0x18] sm:$0xff] }
  0xdc   : > { %552 = vmatmul.mubr.f32.gmra.mxu0 %v411_v19  ;;  %v371_v19 = vld [vmem:[#allocation8 + $0x10] sm:$0xff] }
  0xdd   : > { %557 = vmatprep.mubr.f32.mxu0 %v414_v20  ;;  %v374_v20 = vld [vmem:[#allocation8 + $0x28] sm:$0xff] }
  0xe0   : > { %558 = vmatmul.mubr.f32.gmra.mxu0 %v413_v21  ;;  %v373_v21 = vld [vmem:[#allocation8 + $0x20] sm:$0xff] }
  0xe1   : > { %563 = vmatprep.mubr.f32.mxu0 %v416_v22  ;;  %v376_v22 = vld [vmem:[#allocation8 + $0x38] sm:$0xff] }
  0xe4   : > { %564 = vmatmul.mubr.f32.gmra.mxu0 %v415_v23  ;;  %v375_v23 = vld [vmem:[#allocation8 + $0x30] sm:$0xff] }
  0xe5   : > { %569 = vmatprep.mubr.f32.mxu0 %v418_v25  ;;  %v378_v25 = vld [vmem:[#allocation8 + $0x48] sm:$0xff] }
  0xe8   : > { %570 = vmatmul.mubr.f32.gmra.mxu0 %v417_v26  ;;  %v377_v26 = vld [vmem:[#allocation8 + $0x40] sm:$0xff] }
  0xe9   : > { %575 = vmatprep.mubr.f32.mxu0 %v420_v27  ;;  %v380_v27 = vld [vmem:[#allocation8 + $0x58] sm:$0xff] }
  0xec   : > { %576 = vmatmul.mubr.f32.gmra.mxu0 %v419_v28  ;;  %v379_v28 = vld [vmem:[#allocation8 + $0x50] sm:$0xff] }
  0xed   : > { %581 = vmatprep.mubr.f32.mxu0 %v422_v29  ;;  %v382_v29 = vld [vmem:[#allocation8 + $0x68] sm:$0xff] }
  0xf0   : > { %582 = vmatmul.mubr.f32.gmra.mxu0 %v421_v30  ;;  %v381_v30 = vld [vmem:[#allocation8 + $0x60] sm:$0xff] }
  0xf1   : > { %587 = vmatprep.mubr.f32.mxu0 %v424_v31  ;;  %v384_v31 = vld [vmem:[#allocation8 + $0x78] sm:$0xff] }
  0xf4   : > { %588 = vmatmul.mubr.f32.gmra.mxu0 %v423_v32  ;;  %v383_v32 = vld [vmem:[#allocation8 + $0x70] sm:$0xff] }
  0xf5   : > { %593 = vmatprep.mubr.f32.mxu0 %v426_v33  ;;  %v386_v33 = vld [vmem:[#allocation8 + $0x88] sm:$0xff] }
  0xf8   : > { %594 = vmatmul.mubr.f32.gmra.mxu0 %v425_v34  ;;  %v385_v34 = vld [vmem:[#allocation8 + $0x80] sm:$0xff] }
  0xf9   : > { %599 = vmatprep.mubr.f32.mxu0 %v428_v35  ;;  %v388_v35 = vld [vmem:[#allocation8 + $0x98] sm:$0xff] }
  0xfc   : > { %600 = vmatmul.mubr.f32.gmra.mxu0 %v427_v36  ;;  %v387_v36 = vld [vmem:[#allocation8 + $0x90] sm:$0xff] }
  0xfd   : > { %605 = vmatprep.mubr.f32.mxu0 %v430_v37  ;;  %v390_v37 = vld [vmem:[#allocation8 + $0xa8] sm:$0xff] }
 0x100   : > { %606 = vmatmul.mubr.f32.gmra.mxu0 %v429_v38  ;;  %v389_v38 = vld [vmem:[#allocation8 + $0xa0] sm:$0xff] }
 0x101   : > { %611 = vmatprep.mubr.f32.mxu0 %v432_v39  ;;  %v392_v39 = vld [vmem:[#allocation8 + $0xb8] sm:$0xff] }
 0x104   : > { %612 = vmatmul.mubr.f32.gmra.mxu0 %v431_v24  ;;  %v391_v24 = vld [vmem:[#allocation8 + $0xb0] sm:$0xff] }
 0x178   : > { %v1768_v41 = vpop.f32.mrf.mxu0 }
 0x17a   : > { %v1770_v42 = vpop.f32.mrf.mxu0 }
 0x17c   : > { %v1772_v43 = vpop.f32.mrf.mxu0 }
 0x17e   : > { %v1774_v44 = vpop.f32.mrf.mxu0 }
 0x180   : > { %v511_v45 = vpop.f32.mrf.mxu0 }
 0x182   : > { %v513_v46 = vpop.f32.mrf.mxu0 }
 0x184   : > { %v517_v47 = vpop.f32.mrf.mxu0 }
 0x186   : > { %v519_v48 = vpop.f32.mrf.mxu0 }
 0x188   : > { %v523_v49 = vpop.f32.mrf.mxu0 }
 0x18a   : > { %v525_v50 = vpop.f32.mrf.mxu0 }
 0x18c   : > { %v529_v51 = vpop.f32.mrf.mxu0 }
 0x18e   : > { %v531_v52 = vpop.f32.mrf.mxu0 }
 0x190   : > { %v535_v53 = vpop.f32.mrf.mxu0 }
 0x192   : > { %v537_v54 = vpop.f32.mrf.mxu0 }
 0x194   : > { %v541_v55 = vpop.f32.mrf.mxu0 }
 0x196   : > { %v543_v56 = vpop.f32.mrf.mxu0 }
 0x198   : > { %v547_v57 = vpop.f32.mrf.mxu0 }
 0x19a   : > { %v549_v58 = vpop.f32.mrf.mxu0 }
 0x19c   : > { %v553_v59 = vpop.f32.mrf.mxu0 }
 0x19e   : > { %v555_v60 = vpop.f32.mrf.mxu0 }
 0x1a0   : > { %v559_v61 = vpop.f32.mrf.mxu0 }
 0x1a2   : > { %v561_v62 = vpop.f32.mrf.mxu0 }
 0x1a4   : > { %v565_v63 = vpop.f32.mrf.mxu0 }
 0x1a6   : > { %v567_v0 = vpop.f32.mrf.mxu0 }
 0x1a8   : > { %v571_v1 = vpop.f32.mrf.mxu0 }
 0x1aa   : > { %v573_v2 = vpop.f32.mrf.mxu0 }
 0x1ac   : > { %v577_v3 = vpop.f32.mrf.mxu0 }
 0x1ae   : > { %v579_v4 = vpop.f32.mrf.mxu0 }
 0x1b0   : > { %v583_v5 = vpop.f32.mrf.mxu0 }
 0x1b2   : > { %v585_v6 = vpop.f32.mrf.mxu0 }
 0x1b4   : > { %v589_v7 = vpop.f32.mrf.mxu0 }
 0x1b6   : > { %v591_v8 = vpop.f32.mrf.mxu0 }
 0x1b7   : > { %679 = vmatprep.subr.mxu1 %v591_v8 }
 0x1b8   : > { %680 = vmatpush1.msra.mxu1 %v589_v7  ;;  %v595_v9 = vpop.f32.mrf.mxu0 }
 0x1b9   : > { %681 = vmatprep.subr.mxu1 %v585_v6 }
 0x1ba   : > { %682 = vmatpush1.msra.mxu1 %v583_v5  ;;  %v597_v10 = vpop.f32.mrf.mxu0 }
 0x1bb   : > { %683 = vmatprep.subr.mxu1 %v579_v4 }
 0x1bc   : > { %684 = vmatpush1.msra.mxu1 %v577_v3  ;;  %v601_v11 = vpop.f32.mrf.mxu0 }
 0x1bd   : > { %685 = vmatprep.subr.mxu1 %v573_v2 }
 0x1be   : > { %686 = vmatpush1.msra.mxu1 %v571_v1  ;;  %v603_v12 = vpop.f32.mrf.mxu0 }
 0x1bf   : > { %687 = vmatprep.subr.mxu1 %v567_v0 }
 0x1c0   : > { %688 = vmatpush1.msra.mxu1 %v565_v63  ;;  %v607_v13 = vpop.f32.mrf.mxu0 }
 0x1c1   : > { %689 = vmatprep.subr.mxu1 %v561_v62 }
 0x1c2   : > { %690 = vmatpush1.msra.mxu1 %v559_v61  ;;  %v609_v14 = vpop.f32.mrf.mxu0 }
 0x1c3   : > { %691 = vmatprep.subr.mxu1 %v555_v60 }
 0x1c4   : > { %692 = vmatpush1.msra.mxu1 %v553_v59  ;;  %v613_v15 = vpop.f32.mrf.mxu0 }
 0x1c5   : > { %693 = vmatprep.subr.mxu1 %v549_v58 }
 0x1c6   : > { %694 = vmatpush1.msra.mxu1 %v547_v57  ;;  %v615_v16 = vpop.f32.mrf.mxu0 }
 0x1c7   : > { %695 = vmatprep.subr.mxu1 %v543_v56 }
 0x1c8   : > { %696 = vmatpush1.msra.mxu1 %v541_v55  ;;  %v407_v55 = vld [vmem:[#allocation8 + $0x130] sm:$0xff] }
 0x1c9   : > { %697 = vmatprep.subr.mxu1 %v537_v54  ;;  %v408_v54 = vld [vmem:[#allocation8 + $0x138] sm:$0xff] }
 0x1ca   : > { %698 = vmatpush1.msra.mxu1 %v535_v53  ;;  %v405_v53 = vld [vmem:[#allocation8 + $0x120] sm:$0xff] }
 0x1cb   : > { %699 = vmatprep.subr.mxu1 %v531_v52  ;;  %v406_v52 = vld [vmem:[#allocation8 + $0x128] sm:$0xff] }
 0x1cc   : > { %700 = vmatpush1.msra.mxu1 %v529_v51  ;;  %v403_v51 = vld [vmem:[#allocation8 + $0x110] sm:$0xff] }
 0x1cd   : > { %701 = vmatprep.subr.mxu1 %v525_v50  ;;  %v404_v50 = vld [vmem:[#allocation8 + $0x118] sm:$0xff] }
 0x1ce   : > { %702 = vmatpush1.msra.mxu1 %v523_v49  ;;  %v401_v49 = vld [vmem:[#allocation8 + $0x100] sm:$0xff] }
 0x1cf   : > { %703 = vmatprep.subr.mxu1 %v519_v48  ;;  %v402_v48 = vld [vmem:[#allocation8 + $0x108] sm:$0xff] }
 0x1d0   : > { %704 = vmatpush1.msra.mxu1 %v517_v47  ;;  %v399_v47 = vld [vmem:[#allocation8 + $0xf0] sm:$0xff] }
 0x1d1   : > { %705 = vmatprep.subr.mxu1 %v513_v46  ;;  %v400_v46 = vld [vmem:[#allocation8 + $0xf8] sm:$0xff] }
 0x1d2   : > { %706 = vmatpush1.msra.mxu1 %v511_v45  ;;  %v397_v45 = vld [vmem:[#allocation8 + $0xe0] sm:$0xff] }
 0x1d3   : > { %707 = vmatprep.subr.mxu1 %v1774_v44  ;;  %v398_v44 = vld [vmem:[#allocation8 + $0xe8] sm:$0xff] }
 0x1d4   : > { %708 = vmatpush1.msra.mxu1 %v1772_v43  ;;  %v395_v43 = vld [vmem:[#allocation8 + $0xd0] sm:$0xff] }
 0x1d5   : > { %709 = vmatprep.subr.mxu1 %v1770_v42  ;;  %v396_v42 = vld [vmem:[#allocation8 + $0xd8] sm:$0xff] }
 0x1d6   : > { %710 = vmatpush1.msra.mxu1 %v1768_v41  ;;  %v393_v41 = vld [vmem:[#allocation8 + $0xc0] sm:$0xff] }
 0x1d7   : > { %735 = vmatprep.subr.mxu1 %v615_v16 }
 0x1d8   : > { %736 = vmatpush2.msra.mxu1 %v613_v15 }
 0x1d9   : > { %737 = vmatprep.subr.mxu1 %v609_v14 }
 0x1da   : > { %738 = vmatpush2.msra.mxu1 %v607_v13 }
 0x1db   : > { %739 = vmatprep.subr.mxu1 %v603_v12 }
 0x1dc   : > { %740 = vmatpush2.msra.mxu1 %v601_v11 }
 0x1dd   : > { %741 = vmatprep.subr.mxu1 %v597_v10 }
 0x1de   : > { %742 = vmatpush2.msra.mxu1 %v595_v9 }
 0x1df   : > { %744 = vmatmul.mubr.f32.vlgmr.msra.gmra.mxu1 %v369_v17 }
 0x1e0   : > { %1163 = vmatprep.mubr.msk.f32.mxu1 %vm618_vm0, %v372_v18 }
 0x1e3   : > { %750 = vmatmul.mubr.f32.gmra.mxu1 %v371_v19 }
 0x1e4   : > { %1164 = vmatprep.mubr.msk.f32.mxu1 %vm618_vm0, %v374_v20 }
 0x1e7   : > { %756 = vmatmul.mubr.f32.gmra.mxu1 %v373_v21 }
 0x1e8   : > { %1165 = vmatprep.mubr.msk.f32.mxu1 %vm618_vm0, %v376_v22 }
 0x1eb   : > { %762 = vmatmul.mubr.f32.gmra.mxu1 %v375_v23 }
 0x1ec   : > { %1166 = vmatprep.mubr.msk.f32.mxu1 %vm618_vm0, %v378_v25 }
 0x1ef   : > { %768 = vmatmul.mubr.f32.gmra.mxu1 %v377_v26 }
 0x1f0   : > { %1167 = vmatprep.mubr.msk.f32.mxu1 %vm618_vm0, %v380_v27 }
 0x1f3   : > { %774 = vmatmul.mubr.f32.gmra.mxu1 %v379_v28 }
 0x1f4   : > { %1168 = vmatprep.mubr.msk.f32.mxu1 %vm618_vm0, %v382_v29 }
 0x1f7   : > { %780 = vmatmul.mubr.f32.gmra.mxu1 %v381_v30 }
 0x1f8   : > { %1169 = vmatprep.mubr.msk.f32.mxu1 %vm618_vm0, %v384_v31 }
 0x1fb   : > { %786 = vmatmul.mubr.f32.gmra.mxu1 %v383_v32 }
 0x1fc   : > { %1170 = vmatprep.mubr.msk.f32.mxu1 %vm618_vm0, %v386_v33 }
 0x1ff   : > { %792 = vmatmul.mubr.f32.gmra.mxu1 %v385_v34 }
 0x200   : > { %1171 = vmatprep.mubr.msk.f32.mxu1 %vm618_vm0, %v388_v35 }
 0x203   : > { %798 = vmatmul.mubr.f32.gmra.mxu1 %v387_v36 }
 0x204   : > { %1172 = vmatprep.mubr.msk.f32.mxu1 %vm618_vm0, %v390_v37 }
 0x207   : > { %804 = vmatmul.mubr.f32.gmra.mxu1 %v389_v38 }
 0x208   : > { %1173 = vmatprep.mubr.msk.f32.mxu1 %vm618_vm0, %v392_v39 }
 0x20b   : > { %810 = vmatmul.mubr.f32.gmra.mxu1 %v391_v24 }
 0x20c   : > { %1174 = vmatprep.mubr.msk.f32.mxu1 %vm618_vm0, %v394_v40 }
 0x20f   : > { %816 = vmatmul.mubr.f32.gmra.mxu1 %v393_v41 }
 0x210   : > { %1175 = vmatprep.mubr.msk.f32.mxu1 %vm618_vm0, %v396_v42 }
 0x213   : > { %822 = vmatmul.mubr.f32.gmra.mxu1 %v395_v43 }
 0x214   : > { %1176 = vmatprep.mubr.msk.f32.mxu1 %vm618_vm0, %v398_v44 }
 0x217   : > { %828 = vmatmul.mubr.f32.gmra.mxu1 %v397_v45 }
 0x218   : > { %1177 = vmatprep.mubr.msk.f32.mxu1 %vm618_vm0, %v400_v46 }
 0x21b   : > { %834 = vmatmul.mubr.f32.gmra.mxu1 %v399_v47 }
 0x21c   : > { %1178 = vmatprep.mubr.msk.f32.mxu1 %vm618_vm0, %v402_v48 }
 0x21f   : > { %840 = vmatmul.mubr.f32.gmra.mxu1 %v401_v49 }
 0x220   : > { %1179 = vmatprep.mubr.msk.f32.mxu1 %vm618_vm0, %v404_v50 }
 0x223   : > { %846 = vmatmul.mubr.f32.gmra.mxu1 %v403_v51 }
 0x224   : > { %1180 = vmatprep.mubr.msk.f32.mxu1 %vm618_vm0, %v406_v52 }
 0x227   : > { %852 = vmatmul.mubr.f32.gmra.mxu1 %v405_v53 }
 0x228   : > { %1181 = vmatprep.mubr.msk.f32.mxu1 %vm618_vm0, %v408_v54 }
 0x22b   : > { %858 = vmatmul.mubr.f32.gmra.mxu1 %v407_v55 }
 0x29f   : > { %v745_v56 = vpop.f32.mrf.mxu1 }
 0x2a0   : > { %v864_v17 = vmul.f32 %v745_v56, %v745_v56 }
 0x2a1   : > { %v747_v57 = vpop.f32.mrf.mxu1 }
 0x2a2   : > { %v865_v18 = vmul.f32 %v747_v57, %v747_v57 }
 0x2a3   : > { %v751_v58 = vpop.f32.mrf.mxu1 }
 0x2a4   : > { %v866_v19 = vmul.f32 %v751_v58, %v751_v58 }
 0x2a5   : > { %v1799_v59 = vpop.f32.mrf.mxu1 }
 0x2a6   : > { %v867_v26 = vmul.f32 %v1799_v59, %v1799_v59 }
 0x2a7   : > { %v1801_v60 = vpop.f32.mrf.mxu1 }
 0x2a8   : > { %v868_v27 = vmul.f32 %v1801_v60, %v1801_v60 }
 0x2a9   : > { %v1803_v61 = vpop.f32.mrf.mxu1 }
 0x2aa   : > { %v869_v30 = vmul.f32 %v1803_v61, %v1803_v61 }
 0x2ab   : > { %v1805_v62 = vpop.f32.mrf.mxu1 }
 0x2ac   : > { %v870_v31 = vmul.f32 %v1805_v62, %v1805_v62 }
 0x2ad   : > { %v1807_v63 = vpop.f32.mrf.mxu1 }
 0x2ae   : > { %v1841_v32 = vmul.f32 %v1807_v63, %v1807_v63 }
 0x2af   : > { %v769_v0 = vpop.f32.mrf.mxu1 }
 0x2b0   : > { %v872_v15 = vmul.f32 %v769_v0, %v769_v0  ;;  %v1843_v35 = vmul.f32 %v769_v0, %v745_v56 }
 0x2b1   : > { %v771_v1 = vpop.f32.mrf.mxu1 }
 0x2b2   : > { %v873_v20 = vmul.f32 %v771_v1, %v771_v1  ;;  %v952_v33 = vadd.f32 %v872_v15, %v864_v17  ;;  %v1845_v48 = vmul.f32 %v771_v1, %v747_v57 }
 0x2b3   : > { %v775_v2 = vpop.f32.mrf.mxu1 }
 0x2b4   : > { %v874_v21 = vmul.f32 %v775_v2, %v775_v2  ;;  %v953_v39 = vadd.f32 %v873_v20, %v865_v18  ;;  %v960_v47 = vadd.f32 0.0001, %v952_v33  ;;  %v1847_v49 = vmul.f32 %v775_v2, %v751_v58 }
 0x2b5   : > { %v1809_v3 = vpop.f32.mrf.mxu1 }
 0x2b6   : > { %v875_v22 = vmul.f32 %v1809_v3, %v1809_v3  ;;  %v954_v24 = vadd.f32 %v874_v21, %v866_v19  ;;  %v961_v56 = vadd.f32 0.0001, %v953_v39 }
 0x2b7   : > { %v1811_v4 = vpop.f32.mrf.mxu1 }
 0x2b8   : > { %v876_v23 = vmul.f32 %v1811_v4, %v1811_v4  ;;  %v955_v40 = vadd.f32 %v875_v22, %v867_v26  ;;  %v962_v0 = vadd.f32 0.0001, %v954_v24 }
 0x2b9   : > { %v1813_v5 = vpop.f32.mrf.mxu1 }
 0x2ba   : > { %v956_v41 = vadd.f32 %v876_v23, %v868_v27  ;;  %v877_v50 = vmul.f32 %v1813_v5, %v1813_v5 }
 0x2bb   : > { %v1815_v6 = vpop.f32.mrf.mxu1 }
 0x2bc   : > { %v957_v2 = vadd.f32 %v877_v50, %v869_v30 }
 0x2bd   : > { %v1817_v7 = vpop.f32.mrf.mxu1 }
 0x2bf   : > { %v793_v8 = vpop.f32.mrf.mxu1 }
 0x2c0   : > { %v888_v28 = vsub.f32 %v793_v8, %v864_v17  ;;  %v963_v8 = vadd.f32 0.0001, %v955_v40 }
 0x2c1   : > { %v795_v9 = vpop.f32.mrf.mxu1 }
 0x2c2   : > { %v889_v36 = vsub.f32 %v795_v9, %v865_v18  ;;  %v878_v9 = vmul.f32 %v1815_v6, %v1815_v6 }
 0x2c3   : > { %v799_v10 = vpop.f32.mrf.mxu1 }
 0x2c4   : > { %v890_v43 = vsub.f32 %v799_v10, %v866_v19 }
 0x2c5   : > { %v801_v11 = vpop.f32.mrf.mxu1 }
 0x2c6   : > { %v891_v52 = vsub.f32 %v801_v11, %v867_v26  ;;  %v958_v26 = vadd.f32 %v878_v9, %v870_v31 }
 0x2c7   : > { %v1819_v12 = vpop.f32.mrf.mxu1 }
 0x2c8   : > { %v892_v17 = vsub.f32 %v1819_v12, %v868_v27  ;;  %v965_v27 = vadd.f32 0.0001, %v957_v2 }
 0x2c9   : > { %v1821_v13 = vpop.f32.mrf.mxu1 }
 0x2cb   : > { %v1823_v14 = vpop.f32.mrf.mxu1 }
 0x2cd   : > { %v1825_v16 = vpop.f32.mrf.mxu1 }
 0x2cf   : > { %v817_v25 = vpop.f32.mrf.mxu1 }
 0x2d0   : > { %v896_v29 = vsub.f32 %v817_v25, %v872_v15  ;;  %v964_v15 = vadd.f32 0.0001, %v956_v41 }
 0x2d1   : > { %v819_v34 = vpop.f32.mrf.mxu1 }
 0x2d2   : > { %v968_v37 = vadd.f32 %v896_v29, %v888_v28  ;;  %v897_v38 = vsub.f32 %v819_v34, %v873_v20  ;;  %v893_v20 = vsub.f32 %v1821_v13, %v869_v30  ;;  %v879_v28 = vmul.f32 %v1817_v7, %v1817_v7 }
 0x2d3   : > { %v823_v42 = vpop.f32.mrf.mxu1  ;;  %v894_v29 = vsub.f32 %v1823_v14, %v870_v31  ;;  %v883_v14 = vmul.f32 %v1809_v3, %v1799_v59 }
 0x2d4   : > { %v976_v44 = vadd.f32 0.0009, %v968_v37  ;;  %v969_v45 = vadd.f32 %v897_v38, %v889_v36  ;;  %v898_v46 = vsub.f32 %v823_v42, %v874_v21  ;;  %v959_v31 = vadd.f32 %v879_v28, %v1841_v32 }
 0x2d5   : > { %v825_v51 = vpop.f32.mrf.mxu1 }
 0x2d6   : > { %v977_v53 = vadd.f32 0.0009, %v969_v45  ;;  %v970_v54 = vadd.f32 %v898_v46, %v890_v43  ;;  %v899_v55 = vsub.f32 %v825_v51, %v875_v22  ;;  %v984_v57 = vmul.f32 %v976_v44, %v960_v47 }
 0x2d7   : > { %v829_v10 = vpop.f32.mrf.mxu1  ;;  %v912_v45 = vmul.f32 2.0, %v1843_v35  ;;  %v913_v46 = vmul.f32 2.0, %v1845_v48  ;;  %v966_v47 = vadd.f32 0.0001, %v958_v26  ;;  %v914_v51 = vmul.f32 2.0, %v1847_v49 }
 0x2d8   : > { %v978_v1 = vadd.f32 0.0009, %v970_v54  ;;  %v971_v58 = vadd.f32 %v899_v55, %v891_v52  ;;  %v985_v18 = vmul.f32 %v977_v53, %v961_v56  ;;  %v900_v19 = vsub.f32 %v829_v10, %v876_v23 }
 0x2d9   : > { %v831_v11 = vpop.f32.mrf.mxu1  ;;  %1266 = vrcp.f32 %v984_v57  ;;  %v895_v23 = vsub.f32 %v1825_v16, %v1841_v32  ;;  %v884_v32 = vmul.f32 %v1811_v4, %v1801_v60  ;;  %v967_v52 = vadd.f32 0.0001, %v959_v31 }
 0x2da   : > { %v986_v21 = vmul.f32 %v978_v1, %v962_v0  ;;  %v979_v22 = vadd.f32 0.0009, %v971_v58  ;;  %v901_v25 = vsub.f32 %v831_v11, %v877_v50  ;;  %v972_v33 = vadd.f32 %v900_v19, %v892_v17 }
 0x2db   : > { %v835_v34 = vpop.f32.mrf.mxu1  ;;  %1268 = vrcp.f32 %v985_v18  ;;  %v915_v56 = vmul.f32 2.0, %v883_v14  ;;  %v921_v1 = vadd.f32 0.0001, %v913_v46  ;;  %v922_v58 = vadd.f32 0.0001, %v914_v51 }
 0x2dc   : > { %v987_v36 = vmul.f32 %v979_v22, %v963_v8  ;;  %v973_v37 = vadd.f32 %v901_v25, %v893_v20  ;;  %v902_v12 = vsub.f32 %v835_v34, %v878_v9  ;;  %v980_v13 = vadd.f32 0.0009, %v972_v33 }
 0x2dd   : > { %v837_v30 = vpop.f32.mrf.mxu1  ;;  %1270 = vrcp.f32 %v986_v21  ;;  %v920_v8 = vadd.f32 0.0001, %v912_v45  ;;  %v885_v9 = vmul.f32 %v1813_v5, %v1803_v61  ;;  %v916_v2 = vmul.f32 2.0, %v884_v32 }
 0x2de   : > { %v981_v38 = vadd.f32 0.0009, %v973_v37  ;;  %v974_v39 = vadd.f32 %v902_v12, %v894_v29  ;;  %v903_v24 = vsub.f32 %v837_v30, %v879_v28  ;;  %1272 = vrcp.f32 %v987_v36 }
 0x2df   : > { %v988_v40 = vmul.f32 %v980_v13, %v964_v15  ;;  %v841_v41 = vpop.f32.mrf.mxu1  ;;  %v923_v19 = vadd.f32 0.0001, %v915_v56  ;;  %v917_v22 = vmul.f32 2.0, %v885_v9  ;;  %v886_v61 = vmul.f32 %v1815_v6, %v1805_v62 }
 0x2e0   : > { %v989_v42 = vmul.f32 %v981_v38, %v965_v27  ;;  %v982_v43 = vadd.f32 0.0009, %v974_v39  ;;  %v975_v44 = vadd.f32 %v903_v24, %v895_v23  ;;  %v904_v16 = vsub.f32 %v841_v41, %v1843_v35 }
 0x2e1   : > { %v843_v50 = vpop.f32.mrf.mxu1  ;;  %1274 = vrcp.f32 %v988_v40  ;;  %v924_v37 = vadd.f32 0.0001, %v916_v2  ;;  %v887_v12 = vmul.f32 %v1817_v7, %v1807_v63  ;;  %v925_v6 = vadd.f32 0.0001, %v917_v22 }
 0x2e2   : > { %v983_v59 = vadd.f32 0.0009, %v975_v44  ;;  %v928_v3 = vmul.f32 2.0, %v904_v16  ;;  %v990_v53 = vmul.f32 %v982_v43, %v966_v47  ;;  %v905_v54 = vsub.f32 %v843_v50, %v1845_v48 }
 0x2e3   : > { %v847_v55 = vpop.f32.mrf.mxu1  ;;  %1276 = vrcp.f32 %v989_v42  ;;  %v918_v24 = vmul.f32 2.0, %v886_v61  ;;  %v919_v45 = vmul.f32 2.0, %v887_v12 }
 0x2e4   : > { %v936_v35 = vadd.f32 0.0009, %v928_v3  ;;  %v906_v0 = vsub.f32 %v847_v55, %v1847_v49  ;;  %v991_v10 = vmul.f32 %v983_v59, %v967_v52  ;;  %v929_v15 = vmul.f32 2.0, %v905_v54 }
 0x2e5   : > { %v849_v57 = vpop.f32.mrf.mxu1  ;;  %1278 = vrcp.f32 %v990_v53  ;;  %v926_v59 = vadd.f32 0.0001, %v918_v24  ;;  %v927_v54 = vadd.f32 0.0001, %v919_v45 }
 0x2e6   : > { %v930_v60 = vmul.f32 2.0, %v906_v0  ;;  %v907_v4 = vsub.f32 %v849_v57, %v883_v14  ;;  %v944_v48 = vmul.f32 %v936_v35, %v920_v8  ;;  %v937_v17 = vadd.f32 0.0009, %v929_v15  ;;  %v1267_v21 = vpop.eup %1266 }
 0x2e7   : > { %v853_v18 = vpop.f32.mrf.mxu1  ;;  %1280 = vrcp.f32 %v991_v10 }
 0x2e8   : > { %v938_v11 = vadd.f32 0.0009, %v930_v60  ;;  %v931_v20 = vmul.f32 2.0, %v907_v4  ;;  %v908_v49 = vsub.f32 %v853_v18, %v884_v32  ;;  %v945_v5 = vmul.f32 %v937_v17, %v921_v1  ;;  %v1269_v26 = vpop.eup %1268 }
 0x2e9   : > { %v855_v25 = vpop.f32.mrf.mxu1  ;;  %v993_v27 = vmul.f32 %v1267_v21, %v944_v48 }
 0x2ea   : > { %v946_v28 = vmul.f32 %v938_v11, %v922_v58  ;;  %v939_v29 = vadd.f32 0.0009, %v931_v20  ;;  %v932_v33 = vmul.f32 2.0, %v908_v49  ;;  %v909_v34 = vsub.f32 %v855_v25, %v885_v9  ;;  %v1271_v36 = vpop.eup %1270 }
 0x2eb   : > { %v859_v23 = vpop.f32.mrf.mxu1  ;;  %v1273_v13 = vpop.eup %1272  ;;  %v995_v14 = vmul.f32 %v1269_v26, %v945_v5 }
 0x2ec   : > { %v997_v30 = vmul.f32 %v1271_v36, %v946_v28  ;;  %v947_v38 = vmul.f32 %v939_v29, %v923_v19  ;;  %v940_v39 = vadd.f32 0.0009, %v932_v33  ;;  %v933_v62 = vmul.f32 2.0, %v909_v34 }
 0x2ed   : > { %v910_v31 = vsub.f32 %v859_v23, %v886_v61  ;;  %v861_v40 = vpop.f32.mrf.mxu1 }
 0x2ee   : > { %v1008_v41 = vadd.f32 %v997_v30, %v993_v27  ;;  %v999_v42 = vmul.f32 %v1273_v13, %v947_v38  ;;  %v948_v43 = vmul.f32 %v940_v39, %v924_v37  ;;  %v941_v44 = vadd.f32 0.0009, %v933_v62  ;;  %v1275_v16 = vpop.eup %1274 }
 0x2ef   : > { %v934_v63 = vmul.f32 2.0, %v910_v31  ;;  %v911_v7 = vsub.f32 %v861_v40, %v887_v12 }
 0x2f0   : > { %v1011_v46 = vadd.f32 %v999_v42, %v995_v14  ;;  %v1001_v47 = vmul.f32 %v1275_v16, %v948_v43  ;;  %v949_v50 = vmul.f32 %v941_v44, %v925_v6  ;;  %v1277_v51 = vpop.eup %1276 }
 0x2f1   : > { %v942_v3 = vadd.f32 0.0009, %v934_v63  ;;  %v935_v32 = vmul.f32 2.0, %v911_v7 }
 0x2f2   : > { %v1009_v52 = vadd.f32 %v1008_v41, %v1001_v47  ;;  %v1003_v53 = vmul.f32 %v1277_v51, %v949_v50  ;;  %v1279_v35 = vpop.eup %1278 }
 0x2f3   : > { %v950_v55 = vmul.f32 %v942_v3, %v926_v59  ;;  %v943_v56 = vadd.f32 0.0009, %v935_v32 }
 0x2f4   : > { %v1012_v0 = vadd.f32 %v1011_v46, %v1003_v53  ;;  %v1281_v10 = vpop.eup %1280 }
 0x2f5   : > { %v1005_v8 = vmul.f32 %v1279_v35, %v950_v55  ;;  %v951_v9 = vmul.f32 %v943_v56, %v927_v54 }
 0x2f7   : > { %v1010_v15 = vadd.f32 %v1009_v52, %v1005_v8  ;;  %v1007_v57 = vmul.f32 %v1281_v10, %v951_v9 }
 0x2f9   : > { %v1013_v1 = vadd.f32 %v1012_v0, %v1007_v57  ;;  %1014 = vst [vmem:[%s286_s30] sm:$0xff] %v1010_v15 }
 0x2fb   : > { %1015 = vst [vmem:[%s286_s30 + $0x8] sm:$0xff] %v1013_v1 }
 0x2fc   : > { %1403 = shalt.err (!%p1400_p4)
}
 0x2fd   : > { %s1404_s26 = scalar_lea.hbm %s1029_s13, 256  ;;  %s1408_s5 = scalar_lea.hbm %s1917_s4, 512 }
 0x2fe   : > { %p1405_p5 = scmp.ne.s32.totalorder %s1029_s13, %s1404_s26  ;;  %p1409_p2 = scmp.lt.s32.totalorder %s1029_s13, %s1917_s4 }
 0x2ff   : > { %p1410_p6 = scmp.lt.s32.totalorder %s1408_s5, %s1404_s26 }
 0x300   : > { %p1406_p7 = pnand %p1405_p5, %p1940_p10 }
 0x301   : > { %p1411_p12 = por %p1410_p6, %p1409_p2 }
 0x302   : > { %p1407_p8 = pneg %p1406_p7 }
 0x304   : > { %p1412_p0 = pnand %p1411_p12, %p1407_p8 }
 0x306   : > { %1415 = shalt.err (!%p1412_p0)
}
 0x307   : > { %1204 = dma.vmem_to_hbm [thread:$0]  (%p1940_p10), %s1032_s6, 256, %s1029_s13, %s1017_s29  }
 0x308 PF: > { %s1043_s12 = sand.u32 1, %s1454_s15   ;;  %p1941_p3 = scmp.ne.s32.totalorder %s1927_s22, 0 }
 0x309   : > { %p1942_p11 = scmp.ge.s32.totalorder %s1466_s18, 2  ;;  %s1044_s21 = scalar_lea.sflag [#allocation4], %s1043_s12 }
 0x30b   : > { %p1221_p9 = pnand %p1942_p11, %p1941_p3 }
 0x30d   : > { %p1222_p13 = pneg %p1221_p9 }
 0x30f   : > { %1449 = dma.done.wait (%p1222_p13), %s1044_s21, 256  }
 0x310   : > { %1451 = vsyncadd (%p1222_p13), %s1044_s21, 4294967040  ;;  %p21_p1 = scmp.ge.s32.totalorder %s1578_s11, 4   ;;  %s1943_s15 = smov %s1458_s16 }
 0x311   : > { %s1944_s16 = smov %s1462_s17  ;;  %s1945_s17 = smov %s1594_s20 }
 0x312   : > { %s1946_s18 = smov %s1578_s11  ;;  %23 = sbr.rel (!%p21_p1) target bundleno = 10 (0xa), region = 102 }
 0x317   :  { %1049 = vsyncpa [#allocation3], 1 }
 0x318   :  { %1051 = vsyncpa [#allocation3 + $0x1], 1 }
 0x319   :  { %1052 = vsyncpa [#allocation6], 1 }
 0x31a   :  { %1054 = vsyncpa [#allocation6 + $0x1], 1 }
 0x31b   :  { %1055 = vsyncpa [#allocation9], 1 }
 0x31c   :  { %1056 = vsyncpa [#allocation4], 1 }
 0x31d   :  { %1058 = vsyncpa [#allocation4 + $0x1], 1 }

</bundles_post_ra>
